<compile_context>
chip_gen: v5e
topology: v5e:2x2
jax: 0.10.0
libtpu: 0.0.40
codegen_flags: <defaults>
</compile_context>

<pallas_src>
import functools

import jax
import jax.numpy as jnp
from jax import lax
from jax.experimental import pallas as pl
from jax.experimental.pallas import tpu as pltpu


def temporal_block_kernel(x_ref, w1_ref, b1_ref, w2_ref, b2_ref, wd_ref, bd_ref,
                          o_ref, xc_ref, hc_ref, *, K, d, p, TT):
    """One (batch, time-tile) grid point of the TemporalBlock forward.

    x_ref  : (1, Cin, TT)   bf16 input tile (time on lanes)
    w1_ref : (Cout, K*Cin)  bf16 conv1 taps, stacked along contraction axis
    w2_ref : (Cout, K*Cout) bf16 conv2 taps
    wd_ref : (Cout, Cin)    bf16 1x1 downsample weight
    b*_ref : (Cout, 1)      f32 biases
    o_ref  : (1, Cout, TT)  f32 output tile
    xc_ref : (Cin, p)       bf16 carry: last p timesteps of x from previous tile
    hc_ref : (Cout, p)      bf16 carry: last p timesteps of h1 from previous tile
    """
    j = pl.program_id(1)

    x = x_ref[0]                                        # (Cin, TT) bf16, lane-dense

    if p > 0:
        @pl.when(j == 0)                                # causal zero left boundary
        def _():
            xc_ref[...] = jnp.zeros_like(xc_ref)
            hc_ref[...] = jnp.zeros_like(hc_ref)
        xpad = jnp.concatenate([xc_ref[...], x], axis=1)        # (Cin, p + TT)
    else:
        xpad = x

    def taps(v):
        # stack the K dilated taps along the contraction (sublane) axis
        if K == 1:
            return v[:, :TT]
        return jnp.concatenate([v[:, k * d:k * d + TT] for k in range(K)], axis=0)

    # ---- conv1 (single fused MXU matmul) + bias + ReLU ----
    h1 = jnp.dot(w1_ref[...], taps(xpad), preferred_element_type=jnp.float32)
    h1 = jnp.maximum(h1 + b1_ref[...], 0.0)             # (Cout, TT) f32
    # dropout1: identity (inference)

    h1_b = h1.astype(jnp.bfloat16)
    if p > 0:
        h1pad = jnp.concatenate([hc_ref[...], h1_b], axis=1)    # (Cout, p + TT)
    else:
        h1pad = h1_b

    # ---- conv2 (single fused MXU matmul) + bias + ReLU ----
    h2 = jnp.dot(w2_ref[...], taps(h1pad), preferred_element_type=jnp.float32)
    h2 = jnp.maximum(h2 + b2_ref[...], 0.0)             # (Cout, TT) f32
    # dropout2: identity (inference)

    # ---- residual 1x1-conv downsample + final ReLU ----
    res = jnp.dot(wd_ref[...], x, preferred_element_type=jnp.float32) + bd_ref[...]
    o_ref[0] = jnp.maximum(h2 + res, 0.0).astype(o_ref.dtype)

    # carry the last p timesteps of x and h1 into the next time tile
    if p > 0 and TT >= p:
        xc_ref[...] = x[:, TT - p:]
        hc_ref[...] = h1_b[:, TT - p:]


def _pick_time_tile(T, p):
    """Lane-dense time tile; tile must be >= p so one carry covers the halo."""
    for tt in (1024, 512, 256, 128):
        if T > tt and T % tt == 0 and tt >= p:
            return tt
    return T


def temporal_block(x_nct, w1, b1, w2, b2, wd, bd, *, kernel_size, dilation):
    """Wrapper. x_nct: (B, Cin, T) like PyTorch. Returns (B, Cout, T) f32."""
    B, Cin, T = x_nct.shape
    Cout = w1.shape[0]
    K, d = kernel_size, dilation
    p = d * (K - 1)                                     # causal padding == chomp size
    TT = _pick_time_tile(T, p)
    num_t = T // TT

    # glue: dtypes + weight flattening to matmul form; NO transpose, NO pad of x.
    x_b = x_nct.astype(jnp.bfloat16)                                   # (B, Cin, T)
    w1_f = jnp.transpose(w1, (0, 2, 1)).reshape(Cout, K * Cin).astype(jnp.bfloat16)
    w2_f = jnp.transpose(w2, (0, 2, 1)).reshape(Cout, K * Cout).astype(jnp.bfloat16)
    wd_m = wd[:, :, 0].astype(jnp.bfloat16)                            # (Cout, Cin)
    b1r = b1.reshape(Cout, 1).astype(jnp.float32)
    b2r = b2.reshape(Cout, 1).astype(jnp.float32)
    bdr = bd.reshape(Cout, 1).astype(jnp.float32)

    kernel = functools.partial(temporal_block_kernel, K=K, d=d, p=p, TT=TT)

    out = pl.pallas_call(
        kernel,
        out_shape=jax.ShapeDtypeStruct((B, Cout, T), jnp.float32),
        grid=(B, num_t),
        in_specs=[
            pl.BlockSpec((1, Cin, TT), lambda b, j: (b, 0, j)),
            pl.BlockSpec((Cout, K * Cin), lambda b, j: (0, 0)),
            pl.BlockSpec((Cout, 1), lambda b, j: (0, 0)),
            pl.BlockSpec((Cout, K * Cout), lambda b, j: (0, 0)),
            pl.BlockSpec((Cout, 1), lambda b, j: (0, 0)),
            pl.BlockSpec((Cout, Cin), lambda b, j: (0, 0)),
            pl.BlockSpec((Cout, 1), lambda b, j: (0, 0)),
        ],
        out_specs=pl.BlockSpec((1, Cout, TT), lambda b, j: (b, 0, j)),
        scratch_shapes=[
            pltpu.VMEM((Cin, max(p, 1)), jnp.bfloat16),   # x carry
            pltpu.VMEM((Cout, max(p, 1)), jnp.bfloat16),  # h1 carry
        ],
        compiler_params=pltpu.CompilerParams(
            dimension_semantics=("parallel", "arbitrary"),
            vmem_limit_bytes=32 * 1024 * 1024,
        ),
    )(x_b, w1_f, b1r, w2_f, b2r, wd_m, bdr)
    return out


def reference_temporal_block(x, w1, b1, w2, b2, wd, bd, *, kernel_size, dilation):
    """Pure-JAX f32 reference matching the PyTorch module (eval mode)."""
    d = dilation
    p = d * (kernel_size - 1)
    dn = ('NCH', 'OIH', 'NCH')

    def conv(inp, w, b, dil, pad):
        y = lax.conv_general_dilated(inp, w, window_strides=(1,),
                                     padding=[(pad, pad)], rhs_dilation=(dil,),
                                     dimension_numbers=dn)
        return y + b[None, :, None]

    out = conv(x, w1, b1, d, p)
    out = out[..., :-p] if p > 0 else out
    out = jnp.maximum(out, 0.0)
    out = conv(out, w2, b2, d, p)
    out = out[..., :-p] if p > 0 else out
    out = jnp.maximum(out, 0.0)
    res = conv(x, wd, bd, 1, 0)
    return jnp.maximum(out + res, 0.0)


if __name__ == "__main__":
    def run_case(B, Cin, Cout, T, K, dilation):
        key = jax.random.PRNGKey(0)
        k1, k2, k3, k4, k5, k6, kx = jax.random.split(key, 7)
        # PyTorch Conv1d weight layout: (Cout, Cin, K)
        w1 = 0.2 * jax.random.normal(k1, (Cout, Cin, K), jnp.float32)
        b1 = 0.1 * jax.random.normal(k2, (Cout,), jnp.float32)
        w2 = 0.2 * jax.random.normal(k3, (Cout, Cout, K), jnp.float32)
        b2 = 0.1 * jax.random.normal(k4, (Cout,), jnp.float32)
        wd = 0.2 * jax.random.normal(k5, (Cout, Cin, 1), jnp.float32)  # downsample 1x1
        bd = 0.1 * jax.random.normal(k6, (Cout,), jnp.float32)
        x = jax.random.normal(kx, (B, Cin, T), jnp.float32)            # NCT like PyTorch

        out = temporal_block(x, w1, b1, w2, b2, wd, bd,
                             kernel_size=K, dilation=dilation)
        out = jax.block_until_ready(out)
        ref = reference_temporal_block(x, w1, b1, w2, b2, wd, bd,
                                       kernel_size=K, dilation=dilation)
        ref = jax.block_until_ready(ref)

        assert out.shape == (B, Cout, T), out.shape
        err = float(jnp.max(jnp.abs(out - ref)))
        # bf16 matmul operands / f32 accumulation -> loose-ish tolerance
        assert err < 5e-2, (f"max abs err {err} "
                            f"(B={B},Cin={Cin},Cout={Cout},T={T},K={K},d={dilation})")

    # small shapes consistent with the module (single time tile)
    run_case(B=2, Cin=4, Cout=8, T=16, K=3, dilation=1)
    # multi-tile case exercising the causal carry across time tiles (dilated conv)
    run_case(B=2, Cin=4, Cout=8, T=256, K=3, dilation=2)

    print("KERNEL_OK")
</pallas_src>

<mosaic_0001>
module attributes {stable_mosaic.version = 11 : i64} {
  func.func @temporal_block_kernel(%arg0: i32, %arg1: i32, %arg2: memref<1x4x16xbf16, #tpu.memory_space<vmem>>, %arg3: memref<8x12xbf16, #tpu.memory_space<vmem>>, %arg4: memref<8x1xf32, #tpu.memory_space<vmem>>, %arg5: memref<8x24xbf16, #tpu.memory_space<vmem>>, %arg6: memref<8x1xf32, #tpu.memory_space<vmem>>, %arg7: memref<8x4xbf16, #tpu.memory_space<vmem>>, %arg8: memref<8x1xf32, #tpu.memory_space<vmem>>, %arg9: memref<1x8x16xf32, #tpu.memory_space<vmem>>, %arg10: memref<4x2xbf16, #tpu.memory_space<vmem>>, %arg11: memref<8x2xbf16, #tpu.memory_space<vmem>>) attributes {dimension_semantics = [#tpu.dimension_semantics<parallel>, #tpu.dimension_semantics<arbitrary>], iteration_bounds = array<i64: 2, 1>, scalar_prefetch = 0 : i64, scratch_operands = 2 : i64, tpu.core_type = #tpu.core_type<tc>, window_params = [{transform_indices = @transform_0, window_bounds = array<i64: 1, 4, 16>}, {pipeline_mode = #tpu.pipeline_mode<synchronous>, transform_indices = @transform_1, window_bounds = array<i64: 8, 12>}, {pipeline_mode = #tpu.pipeline_mode<synchronous>, transform_indices = @transform_2, window_bounds = array<i64: 8, 1>}, {pipeline_mode = #tpu.pipeline_mode<synchronous>, transform_indices = @transform_3, window_bounds = array<i64: 8, 24>}, {pipeline_mode = #tpu.pipeline_mode<synchronous>, transform_indices = @transform_4, window_bounds = array<i64: 8, 1>}, {pipeline_mode = #tpu.pipeline_mode<synchronous>, transform_indices = @transform_5, window_bounds = array<i64: 8, 4>}, {pipeline_mode = #tpu.pipeline_mode<synchronous>, transform_indices = @transform_6, window_bounds = array<i64: 8, 1>}, {transform_indices = @transform_7, window_bounds = array<i64: 1, 8, 16>}]} {
    %c0 = arith.constant 0 : index
    %c0_0 = arith.constant 0 : index
    %c0_1 = arith.constant 0 : index
    %0 = vector.load %arg2[%c0, %c0_0, %c0_1] : memref<1x4x16xbf16, #tpu.memory_space<vmem>>, vector<1x4x16xbf16>
    %1 = vector.shape_cast %0 : vector<1x4x16xbf16> to vector<4x16xbf16>
    %c0_i32 = arith.constant 0 : i32
    %2 = arith.cmpi eq, %arg1, %c0_i32 : i32
    %3 = arith.extui %2 : i1 to i32
    %c0_i32_2 = arith.constant 0 : i32
    %4 = arith.cmpi ne, %3, %c0_i32_2 : i32
    scf.if %4 {
      %cst_31 = arith.constant 0.000000e+00 : bf16
      %47 = vector.broadcast %cst_31 : bf16 to vector<4x2xbf16>
      %c0_32 = arith.constant 0 : index
      %c0_33 = arith.constant 0 : index
      %48 = vector.load %arg10[%c0_32, %c0_33] : memref<4x2xbf16, #tpu.memory_space<vmem>>, vector<4x2xbf16>
      tpu.vector_store %arg10[%c0_32, %c0_33], %47 {strides = array<i32>} : memref<4x2xbf16, #tpu.memory_space<vmem>>, vector<4x2xbf16>,
      %cst_34 = arith.constant 0.000000e+00 : bf16
      %49 = vector.broadcast %cst_34 : bf16 to vector<8x2xbf16>
      %c0_35 = arith.constant 0 : index
      %c0_36 = arith.constant 0 : index
      %50 = vector.load %arg11[%c0_35, %c0_36] : memref<8x2xbf16, #tpu.memory_space<vmem>>, vector<8x2xbf16>
      tpu.vector_store %arg11[%c0_35, %c0_36], %49 {strides = array<i32>} : memref<8x2xbf16, #tpu.memory_space<vmem>>, vector<8x2xbf16>,
    } else {
    }
    %c0_3 = arith.constant 0 : index
    %c0_4 = arith.constant 0 : index
    %5 = vector.load %arg10[%c0_3, %c0_4] : memref<4x2xbf16, #tpu.memory_space<vmem>>, vector<4x2xbf16>
    %6 = tpu.concatenate %5, %1 in 1 : vector<4x2xbf16>, vector<4x16xbf16> -> vector<4x18xbf16>
    %c0_5 = arith.constant 0 : index
    %c0_6 = arith.constant 0 : index
    %7 = vector.load %arg3[%c0_5, %c0_6] : memref<8x12xbf16, #tpu.memory_space<vmem>>, vector<8x12xbf16>
    %8 = vector.extract_strided_slice %6 {offsets = [0, 0], sizes = [4, 16], strides = [1, 1]} : vector<4x18xbf16> to vector<4x16xbf16>
    %9 = vector.extract_strided_slice %6 {offsets = [0, 1], sizes = [4, 16], strides = [1, 1]} : vector<4x18xbf16> to vector<4x16xbf16>
    %10 = vector.extract_strided_slice %6 {offsets = [0, 2], sizes = [4, 16], strides = [1, 1]} : vector<4x18xbf16> to vector<4x16xbf16>
    %11 = tpu.concatenate %8, %9, %10 in 0 : vector<4x16xbf16>, vector<4x16xbf16>, vector<4x16xbf16> -> vector<12x16xbf16>
    %cst = arith.constant dense<0.000000e+00> : vector<8x16xf32>
    %12 = tpu.matmul %7, %11, %cst {dimension_numbers = #tpu.dot_dimension_numbers<[1], [0], [0], [1], [0, 0, 1, 1], [], []>} : vector<8x12xbf16>, vector<12x16xbf16>, vector<8x16xf32> -> vector<8x16xf32>
    %c0_7 = arith.constant 0 : index
    %c0_8 = arith.constant 0 : index
    %13 = vector.load %arg4[%c0_7, %c0_8] : memref<8x1xf32, #tpu.memory_space<vmem>>, vector<8x1xf32>
    %14 = vector.broadcast %13 : vector<8x1xf32> to vector<8x16xf32>
    %15 = arith.addf %12, %14 : vector<8x16xf32>
    %cst_9 = arith.constant 0.000000e+00 : f32
    %16 = vector.broadcast %cst_9 : f32 to vector<8x16xf32>
    %17 = arith.maximumf %15, %16 : vector<8x16xf32>
    %18 = arith.truncf %17 : vector<8x16xf32> to vector<8x16xbf16>
    %c0_10 = arith.constant 0 : index
    %c0_11 = arith.constant 0 : index
    %19 = vector.load %arg11[%c0_10, %c0_11] : memref<8x2xbf16, #tpu.memory_space<vmem>>, vector<8x2xbf16>
    %20 = tpu.concatenate %19, %18 in 1 : vector<8x2xbf16>, vector<8x16xbf16> -> vector<8x18xbf16>
    %c0_12 = arith.constant 0 : index
    %c0_13 = arith.constant 0 : index
    %21 = vector.load %arg5[%c0_12, %c0_13] : memref<8x24xbf16, #tpu.memory_space<vmem>>, vector<8x24xbf16>
    %22 = vector.extract_strided_slice %20 {offsets = [0, 0], sizes = [8, 16], strides = [1, 1]} : vector<8x18xbf16> to vector<8x16xbf16>
    %23 = vector.extract_strided_slice %20 {offsets = [0, 1], sizes = [8, 16], strides = [1, 1]} : vector<8x18xbf16> to vector<8x16xbf16>
    %24 = vector.extract_strided_slice %20 {offsets = [0, 2], sizes = [8, 16], strides = [1, 1]} : vector<8x18xbf16> to vector<8x16xbf16>
    %25 = tpu.concatenate %22, %23, %24 in 0 : vector<8x16xbf16>, vector<8x16xbf16>, vector<8x16xbf16> -> vector<24x16xbf16>
    %cst_14 = arith.constant dense<0.000000e+00> : vector<8x16xf32>
    %26 = tpu.matmul %21, %25, %cst_14 {dimension_numbers = #tpu.dot_dimension_numbers<[1], [0], [0], [1], [0, 0, 1, 1], [], []>} : vector<8x24xbf16>, vector<24x16xbf16>, vector<8x16xf32> -> vector<8x16xf32>
    %c0_15 = arith.constant 0 : index
    %c0_16 = arith.constant 0 : index
    %27 = vector.load %arg6[%c0_15, %c0_16] : memref<8x1xf32, #tpu.memory_space<vmem>>, vector<8x1xf32>
    %28 = vector.broadcast %27 : vector<8x1xf32> to vector<8x16xf32>
    %29 = arith.addf %26, %28 : vector<8x16xf32>
    %cst_17 = arith.constant 0.000000e+00 : f32
    %30 = vector.broadcast %cst_17 : f32 to vector<8x16xf32>
    %31 = arith.maximumf %29, %30 : vector<8x16xf32>
    %c0_18 = arith.constant 0 : index
    %c0_19 = arith.constant 0 : index
    %32 = vector.load %arg7[%c0_18, %c0_19] : memref<8x4xbf16, #tpu.memory_space<vmem>>, vector<8x4xbf16>
    %cst_20 = arith.constant dense<0.000000e+00> : vector<8x16xf32>
    %33 = tpu.matmul %32, %1, %cst_20 {dimension_numbers = #tpu.dot_dimension_numbers<[1], [0], [0], [1], [0, 0, 1, 1], [], []>} : vector<8x4xbf16>, vector<4x16xbf16>, vector<8x16xf32> -> vector<8x16xf32>
    %c0_21 = arith.constant 0 : index
    %c0_22 = arith.constant 0 : index
    %34 = vector.load %arg8[%c0_21, %c0_22] : memref<8x1xf32, #tpu.memory_space<vmem>>, vector<8x1xf32>
    %35 = vector.broadcast %34 : vector<8x1xf32> to vector<8x16xf32>
    %36 = arith.addf %33, %35 : vector<8x16xf32>
    %37 = arith.addf %31, %36 : vector<8x16xf32>
    %cst_23 = arith.constant 0.000000e+00 : f32
    %38 = vector.broadcast %cst_23 : f32 to vector<8x16xf32>
    %39 = arith.maximumf %37, %38 : vector<8x16xf32>
    %c0_24 = arith.constant 0 : index
    %c0_25 = arith.constant 0 : index
    %c0_26 = arith.constant 0 : index
    %40 = vector.load %arg9[%c0_24, %c0_25, %c0_26] : memref<1x8x16xf32, #tpu.memory_space<vmem>>, vector<1x8x16xf32>
    %41 = vector.shape_cast %40 : vector<1x8x16xf32> to vector<8x16xf32>
    %42 = vector.shape_cast %39 : vector<8x16xf32> to vector<1x8x16xf32>
    tpu.vector_store %arg9[%c0_24, %c0_25, %c0_26], %42 {strides = array<i32>} : memref<1x8x16xf32, #tpu.memory_space<vmem>>, vector<1x8x16xf32>,
    %43 = vector.extract_strided_slice %1 {offsets = [0, 14], sizes = [4, 2], strides = [1, 1]} : vector<4x16xbf16> to vector<4x2xbf16>
    %c0_27 = arith.constant 0 : index
    %c0_28 = arith.constant 0 : index
    %44 = vector.load %arg10[%c0_27, %c0_28] : memref<4x2xbf16, #tpu.memory_space<vmem>>, vector<4x2xbf16>
    tpu.vector_store %arg10[%c0_27, %c0_28], %43 {strides = array<i32>} : memref<4x2xbf16, #tpu.memory_space<vmem>>, vector<4x2xbf16>,
    %45 = vector.extract_strided_slice %18 {offsets = [0, 14], sizes = [8, 2], strides = [1, 1]} : vector<8x16xbf16> to vector<8x2xbf16>
    %c0_29 = arith.constant 0 : index
    %c0_30 = arith.constant 0 : index
    %46 = vector.load %arg11[%c0_29, %c0_30] : memref<8x2xbf16, #tpu.memory_space<vmem>>, vector<8x2xbf16>
    tpu.vector_store %arg11[%c0_29, %c0_30], %45 {strides = array<i32>} : memref<8x2xbf16, #tpu.memory_space<vmem>>, vector<8x2xbf16>,
    return
  }
  func.func @transform_0(%arg0: i32, %arg1: i32) -> (i32, i32, i32) {
    %c0_i32 = arith.constant 0 : i32
    %c0_i32_0 = arith.constant 0 : i32
    return %arg0, %c0_i32, %arg1 : i32, i32, i32
  }
  func.func @transform_1(%arg0: i32, %arg1: i32) -> (i32, i32) {
    %c0_i32 = arith.constant 0 : i32
    %c0_i32_0 = arith.constant 0 : i32
    %c0_i32_1 = arith.constant 0 : i32
    return %c0_i32, %c0_i32_0 : i32, i32
  }
  func.func @transform_2(%arg0: i32, %arg1: i32) -> (i32, i32) {
    %c0_i32 = arith.constant 0 : i32
    %c0_i32_0 = arith.constant 0 : i32
    %c0_i32_1 = arith.constant 0 : i32
    return %c0_i32, %c0_i32_0 : i32, i32
  }
  func.func @transform_3(%arg0: i32, %arg1: i32) -> (i32, i32) {
    %c0_i32 = arith.constant 0 : i32
    %c0_i32_0 = arith.constant 0 : i32
    %c0_i32_1 = arith.constant 0 : i32
    return %c0_i32, %c0_i32_0 : i32, i32
  }
  func.func @transform_4(%arg0: i32, %arg1: i32) -> (i32, i32) {
    %c0_i32 = arith.constant 0 : i32
    %c0_i32_0 = arith.constant 0 : i32
    %c0_i32_1 = arith.constant 0 : i32
    return %c0_i32, %c0_i32_0 : i32, i32
  }
  func.func @transform_5(%arg0: i32, %arg1: i32) -> (i32, i32) {
    %c0_i32 = arith.constant 0 : i32
    %c0_i32_0 = arith.constant 0 : i32
    %c0_i32_1 = arith.constant 0 : i32
    return %c0_i32, %c0_i32_0 : i32, i32
  }
  func.func @transform_6(%arg0: i32, %arg1: i32) -> (i32, i32) {
    %c0_i32 = arith.constant 0 : i32
    %c0_i32_0 = arith.constant 0 : i32
    %c0_i32_1 = arith.constant 0 : i32
    return %c0_i32, %c0_i32_0 : i32, i32
  }
  func.func @transform_7(%arg0: i32, %arg1: i32) -> (i32, i32, i32) {
    %c0_i32 = arith.constant 0 : i32
    %c0_i32_0 = arith.constant 0 : i32
    return %arg0, %c0_i32, %arg1 : i32, i32, i32
  }
}

</mosaic_0001>

<bundles_post_ra>
// kernel: tpu_custom_call.1
= control target key start
LH: loop header
LB: loop body
LE: loop exit
PB: predicated region body
PF: predicated region fallthrough
CT: control target
= control target key end

     0   :  { %12 = vsyncpa [#allocation5], 0  ;;  %s869_s0 = inlined_call_operand.vmem [shape: bf16[2,4,16], index: 0, kind: input, shape index: {}]   ;;  %s870_s1 = inlined_call_operand.vmem [shape: bf16[8,12], index: 1, kind: input, shape index: {}]   ;;  %s871_s2 = inlined_call_operand.vmem [shape: f32[8,1], index: 2, kind: input, shape index: {}]   ;;  %s872_s3 = inlined_call_operand.vmem [shape: bf16[8,24], index: 3, kind: input, shape index: {}]   ;;  %s873_s4 = inlined_call_operand.vmem [shape: f32[8,1], index: 4, kind: input, shape index: {}]   ;;  %s874_s5 = inlined_call_operand.vmem [shape: bf16[8,4], index: 5, kind: input, shape index: {}]   ;;  %s875_s6 = inlined_call_operand.vmem [shape: f32[8,1], index: 6, kind: input, shape index: {}]   ;;  %s876_s7 = inlined_call_operand.hbm [shape: f32[2,8,16], index: 7, kind: output, shape index: {}]  }
   0x1   :  { %14 = vsyncpa [#allocation5 + $0x1], 0  ;;  %s739_s24 = smov 0   ;;  %s741_s25 = smov 0  }
   0x2   :  { %s743_s26 = smov 0   ;;  %s745_s27 = smov 0  }
   0x3   :  { %s747_s28 = smov 0   ;;  %s749_s29 = smov 0  }
   0x4 LB: > { %s537_s30 = sadd.s32 4294967295, %s692_s29   ;;  %s538_s8 = sadd.s32 4294967294, %s692_s29   ;;  %s692_s29 = sphi %s749_s29, %s20_s29   ;;  %s688_s28 = sphi %s747_s28, %s883_s28   ;;  %s684_s27 = sphi %s745_s27, %s882_s27   ;;  %s680_s26 = sphi %s743_s26, %s881_s26   ;;  %s676_s25 = sphi %s741_s25, %s880_s25   ;;  %s672_s24 = sphi %s739_s24, %s879_s24  }
   0x5   : > { %s32_s9 = sadd.s32 1, %s688_s28  ;;  %s195_s10 = sadd.s32 1, %s680_s26 }
   0x6   : > { %p34_p0 = scmp.ge.s32.totalorder %s32_s9, 2  ;;  %p205_p1 = scmp.ne.s32.totalorder %s680_s26, %s676_s25 }
   0x7   : > { %p206_p2 = scmp.eq.s32.totalorder %s537_s30, 1  ;;  %p211_p3 = scmp.ne.s32.totalorder %s676_s25, %s672_s24 }
   0x8   : > { %s885_s9 = smov (%p34_p0, %s32_s9), 0  ;;  %p212_p5 = scmp.eq.s32.totalorder %s538_s8, 1 }
   0x9   : > { %p779_p4 = por %p206_p2, %p205_p1  ;;  %s190_s12 = ssub.s32 %s688_s28, %s885_s9 }
   0xa   : > { %p541_p6 = scmp.ge.s32.totalorder %s692_s29, 1  ;;  %p193_p7 = scmp.eq.s32.totalorder %s190_s12, 0 }
   0xb   : > { %p786_p8 = por %p212_p5, %p211_p3  ;;  %p258_p9 = scmp.lt.s32.totalorder %s692_s29, 3 }
   0xc   : > { %s792_s14 = scalar_select %p193_p7, %s680_s26, %s195_s10  }
   0xd   : > { %p259_p10 = pnand %p541_p6, %p258_p9 }
   0xe   : > { %p292_p11 = scmp.lt.s32.totalorder (!%p259_p10), %s684_s27, 1  ;;  %s695_s20 = smov (!%p259_p10), 2  }
   0xf   : > { %262 = sbr.rel (%p259_p10) target bundleno = 758 (0x2f6), region = 48  ;;  %s696_s21 = smov (!%p259_p10), 126  }
  0x10   : > { %s697_s22 = smov (!%p259_p10), 127   ;;  %s289_s23 = sand.u32 (!%p259_p10), 1, %s676_s25  }
  0x11   : > { %s542_s30 = sshll.u32 (!%p259_p10), %s289_s23, 3  ;;  %s548_s8 = sshll.u32 (!%p259_p10), %s684_s27, 3 }
  0x14   : > { %vm305_vm0 = vcmask 9216   ;;  %v694_v0 = vmov 0   ;;  %s293_s15 = scalar_select %p292_p11, %s684_s27, 1  ;;  %vm316_vm1 = vcmask 15360   ;;  %v334_v8 = vld [vmem:[%s871_s2] sm:$0xff]  ;;  %vm328_vm2 = vcmask 1041408  }
  0x15   : > { %306 = vst.msk [vmem:[#allocation2] sm:$0x3] %vm305_vm0, %v694_v0  ;;  %611 = vset.pattern.permute.xlu1 %v694_v0  ;;  %612 = vset.pattern.permute.xlu2 %v694_v0  ;;  %v381_v9 = vld [vmem:[%s873_s4] sm:$0xff]  ;;  %vm331_vm3 = vcmask 1043456   ;;  %vm344_vm4 = vcmask 1045504   ;;  %vm340_vm5 = vcmask 97280  }
  0x16   : > { %613 = vset.pattern.permute.xlu0 %v694_v0  ;;  %s543_s16 = sshll.u32 %s293_s15, 1  ;;  %v320_v15 = vld [vmem:[%s870_s1] sm:$0xf]  ;;  %vm307_vm6 = vcmask 11264   ;;  %vm415_vm7 = vcmask 31744   ;;  %vm387_vm8 = vcmask 195584   ;;  %s461_s15 = scalar_lea.hbm %s876_s7, %s548_s8 }
  0x17   : > { %s298_s19 = scalar_lea.vmem %s869_s0, %s543_s16  ;;  %s698_s16 = smov 114   ;;  %308 = vst.msk [vmem:[#allocation3] sm:$0xf] %vm307_vm6, %v694_v0  ;;  %v408_v31 = vld [vmem:[%s874_s5] sm:$0xf]  ;;  %vm436_vm9 = vcmask 130048  }
  0x18   : > { %v300_v1 = vld [vmem:[%s298_s19] sm:$0x3]  ;;  %s465_s18 = sshll.u32 %s461_s15, 4  ;;  %s450_s27 = scalar_lea.sflag [#allocation5], %s289_s23  ;;  %s466_s18 = int_to_ptr.hbm [resolvable:$true] %s465_s18 }
  0x19   : > { %311 = vst [vmem:[#allocation1] ss:$4 sm:$0xff] %v300_v1  ;;  %v419_v30 = vsel %vm328_vm2, %v300_v1, 0  ;;  %v409_v32 = vld [vmem:[%s875_s6] sm:$0xff]  ;;  %s628_s19 = sshra.s32 %s466_s18, 4  ;;  %s629_s19 = int_to_ptr.hbm [resolvable:$true] %s628_s19 }
  0x1a   : > { %428 = vmatpush.bf16.msra.mxu2 %v419_v30  ;;  %v371_v37 = vld [vmem:[%s872_s3] sm:$0xf]  ;;  %p635_p1 = scmp.lt.s32.totalorder %s629_s19, %s876_s7 }
  0x1c   : > { %v309_v3 = vld [vmem:[#allocation2] sm:$0x3] }
  0x1d   : > { %546 = vmatmul.msk.bf16.vlgmr.msra.gmra.mxu2 %vm415_vm7, %v408_v31 }
  0x1e   : > { %v362_v24 = vld [vmem:[#allocation3] sm:$0xf] }
  0x20   : > { %v312_v2 = vld.sshfl [vmem:[#allocation1] sm:$0xff pattern:$0x73625140] }
  0x21   : > { %314 = vrot.lane.b32.xlu0 %v312_v2, %s695_s20 }
  0x93   : > { %v315_v4 = vpop.permute.xlu0 %314 }
  0x94   : > { %v319_v5 = vsel %vm316_vm1, %v309_v3, %v315_v4 }
  0x95   : > { %v325_v6 = vrot.slane %v319_v5, 4  ;;  %v322_v7 = vrot.slane %v319_v5, 6 }
  0x97   : > { %326 = vrot.lane.b32.xlu1 %v325_v6, %s696_s21  ;;  %323 = vrot.lane.b32.xlu0 %v322_v7, %s697_s22 }
  0x9f   : > { %337 = vperm.xlu1 %611, %v334_v8  }
  0xa0   : > { %v430_v38 = vpop.f32.mrf.mxu2 }
  0xa7   : > { %384 = vperm.xlu1 %611, %v381_v9  }
  0xa8   : > { %v432_v39 = vpop.f32.mrf.mxu2 }
 0x109   : > { %v327_v10 = vpop.permute.xlu1 %326  ;;  %v324_v11 = vpop.permute.xlu0 %323 }
 0x10a   : > { %v330_v12 = vsel %vm328_vm2, %v319_v5, %v324_v11 }
 0x10b   : > { %v333_v13 = vsel %vm331_vm3, %v330_v12, %v327_v10 }
 0x10c   : > { %v345_v14 = vsel %vm344_vm4, %v333_v13, 0 }
 0x10d   : > { %354 = vmatpush.bf16.msra.mxu0 %v345_v14 }
 0x110   : > { %544 = vmatmul.msk.bf16.vlgmr.msra.gmra.mxu0 %vm340_vm5, %v320_v15 }
 0x111   : > { %v338_v16 = vpop.permute.xlu1 %337 }
 0x119   : > { %v385_v28 = vpop.permute.xlu1 %384 }
 0x18d   : > { %v356_v17 = vpop.f32.mrf.mxu0 }
 0x18e   : > { %v357_v18 = vadd.f32 %v356_v17, %v338_v16 }
 0x190   : > { %v360_v19 = vmax.f32 %v357_v18, 0.0 }
 0x192   : > { %v361_v20 = vpack.c.bf16 %v360_v19, %v360_v19 }
 0x194   : > { %444 = vrot.lane.b32.xlu1 %v361_v20, %s698_s16  ;;  %v364_v21 = vunpack.c.l.b16 %v361_v20 }
 0x195   : > { %v358_v22 = vpop.f32.mrf.mxu0 }
 0x196   : > { %v365_v23 = vpack.c.b16 %v364_v21, %v364_v21 }
 0x198   : > { %366 = vrot.lane.b32.xlu2 %v365_v23, %s695_s20  ;;  %s630_s20 = scalar_lea.hbm %s629_s19, 8 }
 0x199   : > { %p631_p12 = scmp.ne.s32.totalorder %s629_s19, %s630_s20 }
 0x19b   : > { %p632_p13 = pnand %p631_p12, %p779_p4 }
 0x19d   : > { %p633_p0 = pneg %p632_p13 }
 0x1f2   : > { %v367_v25 = vpop.permute.xlu2 %366 }
 0x1f3   : > { %v370_v26 = vsel %vm316_vm1, %v362_v24, %v367_v25 }
 0x1f4   : > { %376 = vrot.lane.b32.xlu2 %v370_v26, %s696_s21  ;;  %v373_v27 = vrot.slane %v370_v26, 4 }
 0x1f6   : > { %374 = vrot.lane.b32.xlu0 %v373_v27, %s697_s22 }
 0x1fc   : > { %412 = vperm.xlu2 %612, %v409_v32  }
 0x1fe   : > { %439 = vrot.lane.b32.xlu0 %v300_v1, %s698_s16  ;;  %s291_s16 = scalar_lea.vmem [#allocation4], %s542_s30  ;;  %s634_s30 = scalar_lea.hbm %s876_s7, 16 }
 0x1ff   : > { %s463_s17 = sshll.u32 %s291_s16, 4  ;;  %p636_p2 = scmp.lt.s32.totalorder %s634_s30, %s630_s20  ;;  %s464_s17 = int_to_ptr.vmem [resolvable:$true] %s463_s17 }
 0x201   : > { %p637_p3 = por %p636_p2, %p635_p1 }
 0x203   : > { %p638_p5 = pnand %p637_p3, %p633_p0 }
 0x206   : > { %v445_v29 = vpop.permute.xlu1 %444 }
 0x207   : > { %448 = vst.msk [vmem:[#allocation3] sm:$0xf] %vm307_vm6, %v445_v29 }
 0x24e   : > { %v377_v33 = vpop.permute.xlu2 %376 }
 0x24f   : > { %v392_v34 = vsel %vm331_vm3, %v377_v33, 0 }
 0x250   : > { %400 = vmatpush.bf16.msra.mxu1 %v392_v34 }
 0x256   : > { %v413_v41 = vpop.permute.xlu2 %412 }
 0x257   : > { %v431_v44 = vadd.f32 %v430_v38, %v413_v41 }
 0x268   : > { %v375_v35 = vpop.permute.xlu0 %374 }
 0x269   : > { %v379_v36 = vsel %vm331_vm3, %v370_v26, %v375_v35 }
 0x26a   : > { %401 = vmatpush.bf16.msra.mxu1 %v379_v36 }
 0x26d   : > { %545 = vmatmul.msk.bf16.vlgmr.msra.gmra.mxu1 %vm387_vm8, %v371_v37 }
 0x270   : > { %v440_v40 = vpop.permute.xlu0 %439 }
 0x271   : > { %443 = vst.msk [vmem:[#allocation2] sm:$0x3] %vm305_vm0, %v440_v40 }
 0x2ea   : > { %v403_v42 = vpop.f32.mrf.mxu1 }
 0x2eb   : > { %v404_v43 = vadd.f32 %v403_v42, %v385_v28 }
 0x2ed   : > { %v407_v45 = vmax.f32 %v404_v43, 0.0 }
 0x2ef   : > { %v434_v46 = vadd.f32 %v431_v44, %v407_v45 }
 0x2f1   : > { %v435_v47 = vmax.f32 %v434_v46, 0.0 }
 0x2f2   : > { %v405_v48 = vpop.f32.mrf.mxu1 }
 0x2f3   : > { %437 = vst.msk [vmem:[%s291_s16] sm:$0xff] %vm436_vm9, %v435_v47 }
 0x2f4   : > { %641 = shalt.err (!%p638_p5)
}
 0x2f5   : > { %551 = dma.vmem_to_hbm [thread:$0]  (%p779_p4), %s464_s17, 128, %s466_s18, %s450_s27  }
 0x2f6 PF: > { %p557_p6 = scmp.ge.s32.totalorder %s692_s29, 2  ;;  %s477_s23 = sand.u32 1, %s672_s24  }
 0x2f7   : > { %s478_s12 = scalar_lea.sflag [#allocation5], %s477_s23 }
 0x2f8   : > { %p554_p7 = pnand %p557_p6, %p786_p8 }
 0x2fa   : > { %p555_p9 = pneg %p554_p7 }
 0x2fc   : > { %667 = dma.done.wait (%p555_p9), %s478_s12, 128  }
 0x2fd   : > { %669 = vsyncadd (%p555_p9), %s478_s12, 4294967168  ;;  %s20_s29 = sadd.s32 1, %s692_s29   ;;  %s879_s24 = smov %s676_s25 }
 0x2fe   : > { %p17_p10 = scmp.ge.s32.totalorder %s20_s29, 4   ;;  %s880_s25 = smov %s680_s26 }
 0x2ff   : > { %s881_s26 = smov %s792_s14  ;;  %s882_s27 = smov %s688_s28 }
 0x300   : > { %s883_s28 = smov %s885_s9  ;;  %19 = sbr.rel (!%p17_p10) target bundleno = 4 (0x4), region = 87 }
 0x305   :  { %484 = vsyncpa [#allocation5], 1 }
 0x306   :  { %486 = vsyncpa [#allocation5 + $0x1], 1 }

</bundles_post_ra>
